<compile_context>
chip_gen: v7x
topology: tpu7x:2x2x1
jax: 0.10.0
libtpu: 0.0.40
codegen_flags: <defaults>
</compile_context>

<pallas_src>
import jax
import jax.numpy as jnp
from jax.experimental import pallas as pl
from jax.experimental.pallas import tpu as pltpu


def actor_kernel(x_ref, w1_ref, b1_ref, w2_ref, b2_ref, out_ref):
    # Hidden layer on the MXU: bf16 operands, f32 accumulation.
    h = jnp.dot(x_ref[...], w1_ref[...], preferred_element_type=jnp.float32)
    h = jnp.maximum(h + b1_ref[...], 0.0)              # bias + ReLU in f32 (VPU)
    # Output layer: cast h to bf16 for a single native MXU pass; accumulate in f32.
    o = jnp.dot(h.astype(jnp.bfloat16), w2_ref[...],
                preferred_element_type=jnp.float32)
    out_ref[...] = jnp.tanh(o + b2_ref[...]).astype(out_ref.dtype)  # tanh on EUP, f32


def prepare_actor_params(w1, b1, w2, b2):
    """One-time parameter prep: cast weights to bf16 and biases to f32 (1, N).

    Do this ONCE (outside the per-step call path); actor_forward then only
    casts the activations, so no per-call passes over the weight tensors.
    """
    return (w1.astype(jnp.bfloat16),
            jnp.asarray(b1, jnp.float32).reshape(1, -1),
            w2.astype(jnp.bfloat16),
            jnp.asarray(b2, jnp.float32).reshape(1, -1))


def _round_up(x, m):
    return ((x + m - 1) // m) * m


def actor_forward(x, params, *, batch_tile=2048):
    """x: (B, S) float; params = prepare_actor_params(w1, b1, w2, b2).

    Returns (B, A) float32 = tanh(relu(x @ w1 + b1) @ w2 + b2).
    """
    w1_bf, b1_f, w2_bf, b2_f = params
    B, S = x.shape
    H = w1_bf.shape[1]
    A = w2_bf.shape[1]

    x_bf = x.astype(jnp.bfloat16)

    def make_cost(rows):
        return pl.CostEstimate(
            flops=2 * rows * (S * H + H * A),
            transcendentals=rows * A,                  # tanh
            bytes_accessed=(rows * S * 2 + S * H * 2 + H * 4
                            + H * A * 2 + A * 4 + rows * A * 4),
        )

    # No-grid path only for genuinely tiny batches; keeps medium batches on the
    # grid path so v7x megacore (2 TCs) can split them.
    no_grid_threshold = min(128, batch_tile)

    if B <= no_grid_threshold:
        # --- Tiny-batch path: single invocation, no grid, no pipeline machinery.
        out = pl.pallas_call(
            actor_kernel,
            out_shape=jax.ShapeDtypeStruct((B, A), jnp.float32),
            in_specs=[pl.BlockSpec(memory_space=pltpu.MemorySpace.VMEM)] * 5,
            out_specs=pl.BlockSpec(memory_space=pltpu.MemorySpace.VMEM),
            cost_estimate=make_cost(B),
        )(x_bf, w1_bf, b1_f, w2_bf, b2_f)
        return out

    # --- Batch-tiled path: x is the only streamed operand; weights/biases stay
    # VMEM-resident across the grid (index_map -> (0, 0) every step).
    # Tile <= ceil(B/2) so there are always >= 2 tiles (both v7x TCs engaged);
    # saturates at batch_tile for large B so grid-step overhead stays small.
    TB = min(batch_tile, max(8, _round_up(pl.cdiv(B, 2), 8)))
    B_pad = pl.cdiv(B, TB) * TB
    if B_pad != B:
        x_bf = jnp.zeros((B_pad, S), jnp.bfloat16).at[:B].set(x_bf)

    out = pl.pallas_call(
        actor_kernel,
        out_shape=jax.ShapeDtypeStruct((B_pad, A), jnp.float32),
        grid_spec=pltpu.PrefetchScalarGridSpec(
            num_scalar_prefetch=0,
            grid=(B_pad // TB,),
            in_specs=[
                pl.BlockSpec((TB, S), lambda i: (i, 0)),
                pl.BlockSpec((S, H), lambda i: (0, 0)),
                pl.BlockSpec((1, H), lambda i: (0, 0)),
                pl.BlockSpec((H, A), lambda i: (0, 0)),
                pl.BlockSpec((1, A), lambda i: (0, 0)),
            ],
            out_specs=pl.BlockSpec((TB, A), lambda i: (i, 0)),
        ),
        compiler_params=pltpu.CompilerParams(
            dimension_semantics=("parallel",)),        # megacore sharding on v7x
        cost_estimate=make_cost(B_pad),
    )(x_bf, w1_bf, b1_f, w2_bf, b2_f)

    # Only a row trim (compact (B_pad, A) buffer), and only when B % TB != 0.
    return out if B_pad == B else out[:B]


def init_actor_params(key, state_size, action_size, hidden_units):
    """Deterministic init mirroring the PyTorch module:
       - hidden weights ~ U(-1/sqrt(fan), 1/sqrt(fan))   (hidden_init quirk: fan = out_features)
       - output weights ~ U(-3e-3, 3e-3)
       - biases keep default nn.Linear init U(-1/sqrt(in_features), 1/sqrt(in_features))
    """
    k1, k2, k3, k4 = jax.random.split(key, 4)
    lim1 = 1.0 / jnp.sqrt(jnp.float32(hidden_units))
    w1 = jax.random.uniform(k1, (state_size, hidden_units), jnp.float32, -lim1, lim1)
    b1 = jax.random.uniform(
        k2, (1, hidden_units), jnp.float32,
        -1.0 / jnp.sqrt(jnp.float32(state_size)), 1.0 / jnp.sqrt(jnp.float32(state_size)))
    w2 = jax.random.uniform(k3, (hidden_units, action_size), jnp.float32, -3e-3, 3e-3)
    b2 = jax.random.uniform(
        k4, (1, action_size), jnp.float32,
        -1.0 / jnp.sqrt(jnp.float32(hidden_units)), 1.0 / jnp.sqrt(jnp.float32(hidden_units)))
    return w1, b1, w2, b2


if __name__ == "__main__":
    batch = 8
    state_size = 32
    action_size = 8
    hidden_units = 256   # module default

    key = jax.random.PRNGKey(0)
    k_x, k_p = jax.random.split(key)
    x = jax.random.normal(k_x, (batch, state_size), jnp.float32)
    w1, b1, w2, b2 = init_actor_params(k_p, state_size, action_size, hidden_units)
    params = prepare_actor_params(w1, b1, w2, b2)     # one-time prep (bf16 weights)

    # 1) Tiny-batch (no-grid) path.
    out = jax.block_until_ready(actor_forward(x, params))
    ref = jnp.tanh(jnp.maximum(x @ w1 + b1, 0.0) @ w2 + b2)
    assert out.shape == (batch, action_size)
    # bf16 matmul operands -> loosened tolerance vs. the pure-f32 reference.
    assert jnp.allclose(out, ref, atol=2e-2, rtol=2e-2), float(jnp.max(jnp.abs(out - ref)))

    # 2) Batch-tiled (grid) path, forced with a small tile so shapes stay tiny
    #    (batch_tile=8 -> no_grid_threshold=8 -> B=16 takes the grid path, 2 tiles).
    big_batch = 16
    xb = jax.random.normal(jax.random.PRNGKey(1), (big_batch, state_size), jnp.float32)
    out_b = jax.block_until_ready(actor_forward(xb, params, batch_tile=8))
    ref_b = jnp.tanh(jnp.maximum(xb @ w1 + b1, 0.0) @ w2 + b2)
    assert out_b.shape == (big_batch, action_size)
    assert jnp.allclose(out_b, ref_b, atol=2e-2, rtol=2e-2), float(jnp.max(jnp.abs(out_b - ref_b)))

    print("KERNEL_OK")
</pallas_src>

<mosaic_0001>
module attributes {stable_mosaic.version = 11 : i64} {
  func.func @actor_kernel(%arg0: memref<8x32xbf16, #tpu.memory_space<vmem>>, %arg1: memref<32x256xbf16, #tpu.memory_space<vmem>>, %arg2: memref<1x256xf32, #tpu.memory_space<vmem>>, %arg3: memref<256x8xbf16, #tpu.memory_space<vmem>>, %arg4: memref<1x8xf32, #tpu.memory_space<vmem>>, %arg5: memref<8x8xf32, #tpu.memory_space<vmem>>) attributes {dimension_semantics = [], scalar_prefetch = 0 : i64, scratch_operands = 0 : i64, tpu.core_type = #tpu.core_type<tc>} {
    %c0 = arith.constant 0 : index
    %c0_0 = arith.constant 0 : index
    %0 = vector.load %arg0[%c0, %c0_0] : memref<8x32xbf16, #tpu.memory_space<vmem>>, vector<8x32xbf16>
    %c0_1 = arith.constant 0 : index
    %c0_2 = arith.constant 0 : index
    %1 = vector.load %arg1[%c0_1, %c0_2] : memref<32x256xbf16, #tpu.memory_space<vmem>>, vector<32x256xbf16>
    %cst = arith.constant dense<0.000000e+00> : vector<8x256xf32>
    %2 = tpu.matmul %0, %1, %cst {dimension_numbers = #tpu.dot_dimension_numbers<[1], [0], [0], [1], [0, 0, 1, 1], [], []>} : vector<8x32xbf16>, vector<32x256xbf16>, vector<8x256xf32> -> vector<8x256xf32>
    %c0_3 = arith.constant 0 : index
    %c0_4 = arith.constant 0 : index
    %3 = vector.load %arg2[%c0_3, %c0_4] : memref<1x256xf32, #tpu.memory_space<vmem>>, vector<1x256xf32>
    %4 = vector.broadcast %3 : vector<1x256xf32> to vector<8x256xf32>
    %5 = arith.addf %2, %4 : vector<8x256xf32>
    %cst_5 = arith.constant 0.000000e+00 : f32
    %6 = vector.broadcast %cst_5 : f32 to vector<8x256xf32>
    %7 = arith.maximumf %5, %6 : vector<8x256xf32>
    %8 = arith.truncf %7 : vector<8x256xf32> to vector<8x256xbf16>
    %c0_6 = arith.constant 0 : index
    %c0_7 = arith.constant 0 : index
    %9 = vector.load %arg3[%c0_6, %c0_7] : memref<256x8xbf16, #tpu.memory_space<vmem>>, vector<256x8xbf16>
    %cst_8 = arith.constant dense<0.000000e+00> : vector<8x8xf32>
    %10 = tpu.matmul %8, %9, %cst_8 {dimension_numbers = #tpu.dot_dimension_numbers<[1], [0], [0], [1], [0, 0, 1, 1], [], []>} : vector<8x256xbf16>, vector<256x8xbf16>, vector<8x8xf32> -> vector<8x8xf32>
    %c0_9 = arith.constant 0 : index
    %c0_10 = arith.constant 0 : index
    %11 = vector.load %arg4[%c0_9, %c0_10] : memref<1x8xf32, #tpu.memory_space<vmem>>, vector<1x8xf32>
    %12 = vector.broadcast %11 : vector<1x8xf32> to vector<8x8xf32>
    %13 = arith.addf %10, %12 : vector<8x8xf32>
    %14 = math.tanh %13 : vector<8x8xf32>
    %c0_11 = arith.constant 0 : index
    %c0_12 = arith.constant 0 : index
    %15 = vector.load %arg5[%c0_11, %c0_12] : memref<8x8xf32, #tpu.memory_space<vmem>>, vector<8x8xf32>
    tpu.vector_store %arg5[%c0_11, %c0_12], %14 {strides = array<i32>} : memref<8x8xf32, #tpu.memory_space<vmem>>, vector<8x8xf32>,
    return
  }
}

</mosaic_0001>

<bundles_post_ra>
// kernel: tpu_custom_call.1
= control target key start
LH: loop header
LB: loop body
LE: loop exit
PB: predicated region body
PF: predicated region fallthrough
CT: control target
= control target key end

     0   :  { %v394_v2 = vmov 0   ;;  %vm59_vm0 = vcmask 261120   ;;  %s507_s0 = inlined_call_operand.vmem [shape: bf16[8,32], index: 0, kind: input, shape index: {}]   ;;  %s508_s1 = inlined_call_operand.vmem [shape: bf16[32,256], index: 1, kind: input, shape index: {}]   ;;  %s509_s2 = inlined_call_operand.vmem [shape: f32[1,256], index: 2, kind: input, shape index: {}]   ;;  %s510_s3 = inlined_call_operand.vmem [shape: bf16[256,8], index: 3, kind: input, shape index: {}]   ;;  %s511_s4 = inlined_call_operand.vmem [shape: f32[1,8], index: 4, kind: input, shape index: {}]   ;;  %s512_s5 = inlined_call_operand.hbm [shape: f32[8,8], index: 5, kind: output, shape index: {}]  }
   0x1   :  { %v346_v0 = vld [vmem:[%s508_s1 + $0x4] ss:$8 sps:$4 sm:$0xff]   ;;  %v348_v1 = vld [vmem:[%s508_s1] ss:$8 sps:$4 sm:$0xff]   ;;  %95 = vmatprep.mubr.bf16.mxu0 %v394_v2  ;;  %v349_v3 = vld [vmem:[%s508_s1 + $0x14] ss:$8 sps:$4 sm:$0xff]  }
   0x2   :  { %63 = vmatprep.subr.bf16.mxu0 %v346_v0  ;;  %v351_v4 = vld [vmem:[%s508_s1 + $0x10] ss:$8 sps:$4 sm:$0xff]   ;;  %v352_v5 = vld [vmem:[%s510_s3 + $0x40] sm:$0xff]   ;;  %v354_v8 = vld [vmem:[%s510_s3 + $0x48] sm:$0xff]  }
   0x3   :  { %64 = vmatpush1.bf16.msra.mxu0 %v348_v1  ;;  %v353_v6 = vld [vmem:[%s510_s3] sm:$0xff]   ;;  %322 = vmatprep.subr.bf16.mxu1 %v352_v5  ;;  %v355_v9 = vld [vmem:[%s510_s3 + $0x8] sm:$0xff]   ;;  %v356_v10 = vld [vmem:[%s510_s3 + $0x50] sm:$0xff]  }
   0x4   :  { %65 = vmatprep.subr.bf16.mxu0 %v349_v3  ;;  %v22_v7 = vld [vmem:[%s507_s0] sm:$0xf]  ;;  %323 = vmatpush3.bf16.msra.mxu1 %v353_v6  ;;  %v357_v11 = vld [vmem:[%s510_s3 + $0x10] sm:$0xff]   ;;  %v358_v12 = vld [vmem:[%s510_s3 + $0x58] sm:$0xff]  }
   0x5   :  { %324 = vmatprep.subr.bf16.mxu1 %v354_v8  ;;  %v359_v13 = vld [vmem:[%s510_s3 + $0x18] sm:$0xff]   ;;  %v360_v14 = vld [vmem:[%s510_s3 + $0x60] sm:$0xff]  }
   0x6   :  { %v361_v15 = vld [vmem:[%s510_s3 + $0x20] sm:$0xff]  }
   0x7   :  { %66 = vmatpush1.bf16.msra.mxu0 %v351_v4 }
   0x8   :  { %325 = vmatpush3.bf16.msra.mxu1 %v355_v9 }
   0x9   :  { %326 = vmatprep.subr.bf16.mxu1 %v356_v10 }
   0xa   :  { %304 = vmatmul.mubr.msk.bf16.vlgmr.msra.gmra.mrb[0].mxu0 %vm59_vm0, %v22_v7 }
   0xc   :  { %327 = vmatpush3.bf16.msra.mxu1 %v357_v11 }
   0xd   :  { %328 = vmatprep.subr.bf16.mxu1 %v358_v12 }
  0x10   :  { %329 = vmatpush3.bf16.msra.mxu1 %v359_v13 }
  0x11   :  { %10 = vsyncpa [#allocation3], 0  ;;  %330 = vmatprep.subr.bf16.mxu1 %v360_v14  ;;  %v362_v16 = vld [vmem:[%s510_s3 + $0x68] sm:$0xff]   ;;  %v364_v18 = vld [vmem:[%s510_s3 + $0x70] sm:$0xff]   ;;  %v29_v22 = vlaneseq  ;;  %vm284_vm1 = vcmask 64512  }
  0x12   :  { %v363_v17 = vld [vmem:[%s510_s3 + $0x28] sm:$0xff]   ;;  %v365_v19 = vld [vmem:[%s510_s3 + $0x30] sm:$0xff]   ;;  %v366_v20 = vld [vmem:[%s510_s3 + $0x78] sm:$0xff]  }
  0x13   :  { %v367_v21 = vld [vmem:[%s510_s3 + $0x38] sm:$0xff]   ;;  %v30_v23 = vshrl.u32 %v29_v22, 7  ;;  %v27_v25 = vld [vmem:[%s509_s2] sm:$0x3]  ;;  %s395_s2 = smov [#allocation2]  }
  0x14   :  { %331 = vmatpush3.bf16.msra.mxu1 %v361_v15  ;;  %v305_v40 = vld [vmem:[%s511_s4] ss:$0 sm:$0xff]  ;;  %s292_s10 = sshll.u32 %s395_s2, 4  ;;  %s293_s10 = int_to_ptr.vmem [resolvable:$true] %s292_s10 }
  0x15   :  { %332 = vmatprep.subr.bf16.mxu1 %v362_v16  ;;  %v31_v24 = vsub.s32 0, %v30_v23  ;;  %v35_v26 = vsub.s32 1, %v30_v23  ;;  %s370_s11 = scalar_lea.vmem %s293_s10, 128  ;;  %p375_p1 = scmp.lt.s32.totalorder %s293_s10, %s293_s10 }
  0x16   :  { %p371_p0 = scmp.ne.s32.totalorder %s293_s10, %s370_s11  ;;  %p376_p2 = scmp.lt.s32.totalorder %s370_s11, %s370_s11 }
  0x17   :  { %v32_v27 = vrot.slane %v27_v25, %v31_v24  ;;  %v36_v28 = vrot.slane %v27_v25, %v35_v26 }
  0x18   :  { %333 = vmatpush3.bf16.msra.mxu1 %v363_v17  ;;  %p377_p3 = por %p376_p2, %p375_p1 }
  0x19   :  { %334 = vmatprep.subr.bf16.mxu1 %v364_v18 }
  0x1a   :  { %p378_p4 = pnand %p377_p3, %p371_p0 }
  0x1c   :  { %335 = vmatpush3.bf16.msra.mxu1 %v365_v19 }
  0x1d   :  { %336 = vmatprep.subr.bf16.mxu1 %v366_v20 }
  0x20   :  { %337 = vmatpush3.bf16.msra.mxu1 %v367_v21 }
  0xdd   :  { %v97_v29 = vpop.f32.mrb[0].mxu0 }
  0xde   :  { %v98_v30 = vadd.f32 %v97_v29, %v32_v27  ;;  %v99_v31 = vpop.f32.mrb[1].mxu0 }
  0xdf   :  { %v100_v32 = vadd.f32 %v99_v31, %v36_v28  ;;  %v101_v33 = vpop.f32.mrb[2].mxu0 }
  0xe0   :  { %v104_v34 = vmax.f32 %v98_v30, 0.0  ;;  %v102_v35 = vpop.f32.mrb[3].mxu0 }
  0xe1   :  { %v105_v36 = vmax.f32 %v100_v32, 0.0 }
  0xe2   :  { %v106_v38 = vpack.c.bf16 %v104_v34, %v104_v34 }
  0xe3   :  { %v107_v37 = vpack.c.bf16 %v105_v36, %v105_v36 }
  0xe5   :  { %275 = vmatprep.mubr.bf16.mxu1 %v107_v37 }
  0xe6   :  { %276 = vmatmul.mubr.bf16.vlgmr.msra.gmra.mrb[0].mxu1 %v106_v38 }
 0x1b9   :  { %v338_v39 = vpop.f32.mrb[0].mxu1 }
 0x1ba   :  { %v339_v41 = vpop.f32.mrb[1].mxu1 }
 0x1bb   :  { %v340_v42 = vadd.f32 %v339_v41, %v338_v39  ;;  %v341_v43 = vpop.f32.mrb[2].mxu1 }
 0x1bc   :  { %v342_v44 = vpop.f32.mrb[3].mxu1 }
 0x1bd   :  { %v278_v45 = vadd.f32 %v340_v42, %v305_v40 }
 0x1bf   :  { %368 = vtanh.f32 %v278_v45 }
 0x1c9   :  { %v369_v46 = vpop.eup %368 }
 0x1ca   :  { %285 = vst.msk [vmem:[#allocation2] sm:$0xff] %vm284_vm1, %v369_v46 }
 0x1cb   :  { %381 = shalt.err (!%p378_p4)
}
 0x1cc   :  { %s382_s12 = scalar_lea.hbm %s512_s5, 128 }
 0x1cd   :  { %p383_p5 = scmp.ne.s32.totalorder %s512_s5, %s382_s12  ;;  %p386_p6 = scmp.lt.u32.totalorder %s382_s12, %s512_s5 }
 0x1cf   :  { %p388_p7 = pnand %p386_p6, %p383_p5 }
 0x1d1   :  { %391 = shalt.err (!%p388_p7)
}
 0x1d2   :  { %295 = dma.vmem_to_hbm [thread:$0]  %s293_s10, 128, %s512_s5, [#allocation3]  }
 0x1d3   :  { %392 = dma.done.wait [#allocation3], 128  }
 0x1d4   :  { %393 = vsyncadd [#allocation3], 4294967168 }
 0x1d5   :  { %299 = vsyncpa [#allocation3], 1 }

</bundles_post_ra>
